<compile_context>
chip_gen: v5e
topology: v5e:2x2
jax: 0.10.0
libtpu: 0.0.40
codegen_flags: <defaults>
</compile_context>

<pallas_src>
import math

import jax
import jax.numpy as jnp
from jax.experimental import pallas as pl
from jax.experimental.pallas import tpu as pltpu

# Global embedding size (the original file references a module-level
# `embedding_size` global inside __init__).
EMBEDDING_SIZE = 32

_LANE = 128                    # TPU vreg lane width
_TILE_BYTES = 4 << 20          # ~4 MiB per VMEM buffer (double-buffered by Pallas)
_MIN_STEP_BYTES = 1 << 20      # don't shrink a step below ~1 MiB (overhead dominates)
_MIN_GRID_STEPS = 8            # >= 4 steps per TensorCore on a 2-core chip (v7x)
_SUBLANE = {4: 8, 2: 16, 1: 32}  # sublane packing per itemsize


def make_pe_table(max_len: int, d_model: int) -> jnp.ndarray:
    """Deterministic buffer init, identical math to the PyTorch __init__.

    NOTE: keeps the original module's (non-canonical) convention on purpose:
    base 1e5, cos on even columns, sin on odd columns.
    """
    if d_model % 2 != 0:
        raise ValueError(f"d_model must be even for this PE table, got {d_model}")
    pos = jnp.arange(0, max_len, dtype=jnp.float32)[:, None]            # [max_len, 1]
    div = jnp.exp(
        -math.log(100000.0 * 1.0) / d_model
        * jnp.arange(0, d_model, 2, dtype=jnp.float32)
    )                                                                    # [d_model/2]
    pe = jnp.zeros((max_len, d_model), dtype=jnp.float32)
    pe = pe.at[:, 1::2].set(jnp.sin(pos * div))
    pe = pe.at[:, 0::2].set(jnp.cos(pos * div))
    return pe                                                            # [max_len, d_model]


def _add_pe_kernel(x_ref, pe_ref, o_ref):
    # x_ref/o_ref: (t_b, t_rows, width) lane-dense tiles; pe_ref: (t_rows, width) f32.
    # Accumulate in f32 (matches PyTorch promote-then-cast), cast on store.
    # Pure VPU elementwise add with unmasked, lane-dense stores; DMA-bound.
    x = x_ref[...].astype(jnp.float32)
    o_ref[...] = (x + pe_ref[...]).astype(o_ref.dtype)


def _pick_lane_width(flat: int) -> int:
    """Largest lane-dense width (multiple of 128) that divides S*D, else 0."""
    for w in (1024, 512, 256, _LANE):
        if flat % w == 0:
            return w
    return 0


def _choose_tiling(B: int, n_rows: int, width: int, itemsize: int):
    """Pick (t_b, t_rows): batch elements and flattened rows per grid step."""
    sub = _SUBLANE.get(itemsize, 8)
    row_bytes = width * itemsize
    slab_bytes = n_rows * row_bytes              # one batch element, flattened

    target_rows = max(sub, _TILE_BYTES // row_bytes)
    if target_rows >= n_rows:
        # Whole per-batch slab fits in one tile: block the batch dim so each
        # step moves ~_TILE_BYTES, but keep >= _MIN_GRID_STEPS steps when the
        # batch is large enough (megacore + double-buffering).
        t_rows = n_rows
        t_b = max(1, _TILE_BYTES // max(1, slab_bytes))
        t_b = min(t_b, B, max(1, B // _MIN_GRID_STEPS))
        if t_b > 1 and B % t_b != 0:
            # Prefer an exact divisor of B (avoids one masked edge block),
            # but never shrink the block by more than 2x for it.
            for cand in range(t_b, max(1, t_b // 2) - 1, -1):
                if B % cand == 0:
                    t_b = cand
                    break
    else:
        # Per-batch slab exceeds the tile target: one batch element per step,
        # tile along the flattened rows (sublane-aligned for the dtype).
        t_b = 1
        t_rows = max(sub, (target_rows // sub) * sub)
        if n_rows % t_rows != 0:
            for cand in range(t_rows, max(sub, t_rows // 2) - 1, -sub):
                if n_rows % cand == 0:
                    t_rows = cand
                    break

    # Small batch + sizable slab: split rows so both v7x TensorCores get work
    # and DMA can double-buffer, but never below ~1 MiB per step (the fixed
    # ~0.35us/step pipeline cost would dominate).
    grid_b = pl.cdiv(B, t_b)
    if grid_b * pl.cdiv(n_rows, t_rows) < _MIN_GRID_STEPS and t_rows > sub:
        want_blocks = pl.cdiv(_MIN_GRID_STEPS, grid_b)
        cand = max(sub, (pl.cdiv(n_rows, want_blocks) // sub) * sub)
        if cand < t_rows and cand * row_bytes >= _MIN_STEP_BYTES:
            t_rows = cand

    return t_b, t_rows


def positional_embedding(x: jnp.ndarray, pe: jnp.ndarray) -> jnp.ndarray:
    """x: [B, S, D]; pe: [max_len, D] -> [B, S, D] (x + pe broadcast over batch)."""
    B, S, D = x.shape
    max_len, d_model = pe.shape
    if D != d_model:
        raise ValueError(f"embedding dim mismatch: x has {D}, pe has {d_model}")
    if S > max_len:
        raise ValueError(f"sequence length {S} exceeds PE table max_len {max_len}")

    flat = S * D
    width = _pick_lane_width(flat)
    itemsize = jnp.dtype(x.dtype).itemsize
    if width == 0:
        # S*D not 128-aligned: a standalone Pallas kernel would emit masked
        # partial stores; the fused XLA broadcast add is the better choice.
        return (x.astype(jnp.float32) + pe[None, :S, :]).astype(x.dtype)

    n_rows = flat // width
    t_b, t_rows = _choose_tiling(B, n_rows, width, itemsize)
    # Batch is the innermost grid axis: the PE tile's block index only changes
    # when the row block changes, so it stays resident in VMEM across
    # consecutive steps (and is fetched exactly once when grid_rows == 1,
    # the common case for D=32).
    grid = (pl.cdiv(n_rows, t_rows), pl.cdiv(B, t_b))

    # Lane-dense views. x.reshape is a contiguous bitcast; pe[:S] is a one-time
    # S*D read (negligible vs. the B*S*D stream) and stays f32 for the add.
    x2 = x.reshape(B, n_rows, width)
    pe2 = pe[:S].astype(jnp.float32).reshape(n_rows, width)

    # 2x(x in) + 2x(out) + 2x(pe tile) plus headroom; capped under the 64 MiB
    # physical VMEM of a v7x TensorCore, explicit so v5e's 16 MiB scoped
    # default does not reject the bigger tiles.
    vmem_need = 4 * t_b * t_rows * width * itemsize + 2 * t_rows * width * 4
    vmem_limit = int(min(max(32 << 20, vmem_need + (8 << 20)), 60 << 20))

    out = pl.pallas_call(
        _add_pe_kernel,
        out_shape=jax.ShapeDtypeStruct((B, n_rows, width), x.dtype),
        grid_spec=pltpu.PrefetchScalarGridSpec(
            num_scalar_prefetch=0,
            grid=grid,
            in_specs=[
                pl.BlockSpec((t_b, t_rows, width), lambda r, b: (b, r, 0)),  # x tile
                pl.BlockSpec((t_rows, width), lambda r, b: (r, 0)),          # shared PE tile
            ],
            out_specs=pl.BlockSpec((t_b, t_rows, width), lambda r, b: (b, r, 0)),
        ),
        # Mirror the PyTorch in-place `x +=`: avoid a second B*S*D HBM buffer
        # (only effective if the caller can donate x).
        input_output_aliases={0: 0},
        # Advisory: this is a pure HBM-bandwidth op (read x, read pe, write out).
        cost_estimate=pl.CostEstimate(
            flops=B * S * D,
            transcendentals=0,
            bytes_accessed=2 * B * S * D * itemsize + S * D * 4,
        ),
        compiler_params=pltpu.CompilerParams(
            dimension_semantics=("parallel", "parallel"),
            vmem_limit_bytes=vmem_limit,
        ),
    )(x2, pe2)
    # TODO(synk): in a full model this add should be fused into the epilogue of
    # the adjacent embedding-lookup / matmul kernel rather than stand alone.
    return out.reshape(B, S, D)


def positional_embedding_ref(x: jnp.ndarray, pe: jnp.ndarray) -> jnp.ndarray:
    """Pure-JAX reference mirroring the PyTorch forward."""
    return x + pe[None, : x.shape[1], :]


if __name__ == "__main__":
    key = jax.random.PRNGKey(0)

    d_model = EMBEDDING_SIZE
    max_len = 64  # small stand-in for the default 5000
    pe = make_pe_table(max_len, d_model)

    # Case 1: batch=2, seq=8 -> flat=256 -> width=256, n_rows=1 (tiny slab, t_b=1).
    x = jax.random.normal(key, (2, 8, d_model), dtype=jnp.float32)
    out = jax.block_until_ready(positional_embedding(x, pe))
    ref = positional_embedding_ref(x, pe)
    assert out.shape == (2, 8, d_model)
    assert out.dtype == jnp.float32
    assert jnp.allclose(out, ref, atol=1e-6, rtol=1e-6)

    # Case 2: batch=16, seq=40 -> width=256, n_rows=5; exercises batch blocking
    # (t_b=2 -> 8 grid steps, >=4 per TensorCore on a 2-core chip).
    x2 = jax.random.normal(jax.random.PRNGKey(1), (16, 40, d_model), dtype=jnp.float32)
    out2 = jax.block_until_ready(positional_embedding(x2, pe))
    ref2 = positional_embedding_ref(x2, pe)
    assert jnp.allclose(out2, ref2, atol=1e-6, rtol=1e-6)

    # Case 3: bf16 input -> add in f32 in-kernel, cast on store.
    x3 = jax.random.normal(jax.random.PRNGKey(2), (2, 8, d_model), dtype=jnp.bfloat16)
    out3 = jax.block_until_ready(positional_embedding(x3, pe))
    ref3 = (x3.astype(jnp.float32) + pe[None, :8, :]).astype(jnp.bfloat16)
    assert out3.dtype == jnp.bfloat16
    assert jnp.allclose(out3.astype(jnp.float32), ref3.astype(jnp.float32),
                        atol=1e-2, rtol=1e-2)

    print("KERNEL_OK")
</pallas_src>

<mosaic_0001>
module attributes {stable_mosaic.version = 11 : i64} {
  func.func @_add_pe_kernel(%arg0: i32, %arg1: i32, %arg2: memref<1x1x256xf32, #tpu.memory_space<vmem>>, %arg3: memref<1x256xf32, #tpu.memory_space<vmem>>, %arg4: memref<1x1x256xf32, #tpu.memory_space<vmem>>) attributes {dimension_semantics = [#tpu.dimension_semantics<parallel>, #tpu.dimension_semantics<parallel>], iteration_bounds = array<i64: 1, 2>, scalar_prefetch = 0 : i64, scratch_operands = 0 : i64, tpu.core_type = #tpu.core_type<tc>, window_params = [{transform_indices = @transform_0, window_bounds = array<i64: 1, 1, 256>}, {transform_indices = @transform_1, window_bounds = array<i64: 1, 256>}, {transform_indices = @transform_2, window_bounds = array<i64: 1, 1, 256>}]} {
    %c0 = arith.constant 0 : index
    %c0_0 = arith.constant 0 : index
    %c0_1 = arith.constant 0 : index
    %0 = vector.load %arg2[%c0, %c0_0, %c0_1] : memref<1x1x256xf32, #tpu.memory_space<vmem>>, vector<1x1x256xf32>
    %c0_2 = arith.constant 0 : index
    %c0_3 = arith.constant 0 : index
    %1 = vector.load %arg3[%c0_2, %c0_3] : memref<1x256xf32, #tpu.memory_space<vmem>>, vector<1x256xf32>
    %2 = vector.shape_cast %1 : vector<1x256xf32> to vector<1x1x256xf32>
    %3 = arith.addf %0, %2 : vector<1x1x256xf32>
    %c0_4 = arith.constant 0 : index
    %c0_5 = arith.constant 0 : index
    %c0_6 = arith.constant 0 : index
    %4 = vector.load %arg4[%c0_4, %c0_5, %c0_6] : memref<1x1x256xf32, #tpu.memory_space<vmem>>, vector<1x1x256xf32>
    tpu.vector_store %arg4[%c0_4, %c0_5, %c0_6], %3 {strides = array<i32>} : memref<1x1x256xf32, #tpu.memory_space<vmem>>, vector<1x1x256xf32>,
    return
  }
  func.func @transform_0(%arg0: i32, %arg1: i32) -> (i32, i32, i32) {
    %c0_i32 = arith.constant 0 : i32
    %c0_i32_0 = arith.constant 0 : i32
    return %arg1, %arg0, %c0_i32 : i32, i32, i32
  }
  func.func @transform_1(%arg0: i32, %arg1: i32) -> (i32, i32) {
    %c0_i32 = arith.constant 0 : i32
    %c0_i32_0 = arith.constant 0 : i32
    return %arg0, %c0_i32 : i32, i32
  }
  func.func @transform_2(%arg0: i32, %arg1: i32) -> (i32, i32, i32) {
    %c0_i32 = arith.constant 0 : i32
    %c0_i32_0 = arith.constant 0 : i32
    return %arg1, %arg0, %c0_i32 : i32, i32, i32
  }
}

</mosaic_0001>

<bundles_post_ra>
// kernel: tpu_custom_call.1
= control target key start
LH: loop header
LB: loop body
LE: loop exit
PB: predicated region body
PF: predicated region fallthrough
CT: control target
= control target key end

     0   :  { %7 = vsyncpa [#allocation3], 0  ;;  %s647_s0 = inlined_call_operand.hbm [shape: f32[2,1,256], index: 0, kind: input, shape index: {}, may-alias: {0,2}]   ;;  %s648_s1 = inlined_call_operand.vmem [shape: f32[1,256], index: 1, kind: input, shape index: {}]   ;;  %s649_s2 = inlined_call_operand.hbm [shape: f32[2,1,256], index: 2, kind: output, shape index: {}, may-alias: {0,2}]  }
   0x1   :  { %9 = vsyncpa [#allocation3 + $0x1], 0 }
   0x2   :  { %10 = vsyncpa [#allocation4], 0 }
   0x3   :  { %12 = vsyncpa [#allocation4 + $0x1], 0  ;;  %s524_s9 = smov 0   ;;  %s526_s10 = smov 0  }
   0x4   :  { %s528_s11 = smov 0   ;;  %s530_s12 = smov 0  }
   0x5   :  { %s532_s13 = smov 0   ;;  %s534_s14 = smov 0  }
   0x6 LB: > { %s319_s15 = sadd.s32 4294967295, %s507_s14   ;;  %s320_s16 = sadd.s32 4294967294, %s507_s14   ;;  %s507_s14 = sphi %s534_s14, %s18_s14   ;;  %s503_s13 = sphi %s532_s13, %s658_s13   ;;  %s499_s12 = sphi %s530_s12, %s657_s12   ;;  %s495_s11 = sphi %s528_s11, %s656_s11   ;;  %s491_s10 = sphi %s526_s10, %s655_s10   ;;  %s487_s9 = sphi %s524_s9, %s654_s9  }
   0x7   : > { %s27_s17 = sadd.s32 1, %s503_s13  ;;  %s39_s18 = sadd.s32 1, %s495_s11 }
   0x8   : > { %p28_p0 = scmp.ge.s32.totalorder %s27_s17, 2  ;;  %p46_p1 = scmp.ne.s32.totalorder %s495_s11, %s491_s10 }
   0x9   : > { %p47_p2 = scmp.eq.s32.totalorder %s507_s14, 0  ;;  %p52_p3 = scmp.ne.s32.totalorder %s491_s10, %s487_s9 }
   0xa   : > { %s660_s17 = smov (%p28_p0, %s27_s17), 0  ;;  %p53_p5 = scmp.eq.s32.totalorder %s319_s15, 0 }
   0xb   : > { %p565_p4 = por %p47_p2, %p46_p1  ;;  %s34_s20 = ssub.s32 %s503_s13, %s660_s17 }
   0xc   : > { %p104_p6 = scmp.eq.s32.totalorder %s319_s15, 1  ;;  %p37_p7 = scmp.eq.s32.totalorder %s34_s20, 0 }
   0xd   : > { %p571_p8 = por %p53_p5, %p52_p3  ;;  %p110_p10 = scmp.eq.s32.totalorder %s320_s16, 1 }
   0xe   : > { %p575_p9 = por %p104_p6, %p46_p1  ;;  %p323_p12 = scmp.ge.s32.totalorder %s507_s14, 2 }
   0xf   : > { %s580_s23 = scalar_select %p37_p7, %s495_s11, %s39_s18  }
  0x10   : > { %p582_p11 = por %p110_p10, %p52_p3  ;;  %p345_p13 = scmp.lt.s32.totalorder %s507_s14, 2 }
  0x11   : > { %s137_s25 = sand.u32 1, %s495_s11   ;;  %s325_s27 = sshll.u32 %s503_s13, 1 }
  0x12   : > { %s324_s26 = sshll.u32 %s137_s25, 1  ;;  %s147_s30 = scalar_lea.hbm %s647_s0, %s325_s27 }
  0x13   : > { %s141_s3 = scalar_lea.vmem [#allocation2], %s324_s26  ;;  %s149_s5 = sshll.u32 %s147_s30, 4  ;;  %s150_s5 = int_to_ptr.hbm [resolvable:$true] %s149_s5 }
  0x14   : > { %s151_s4 = sshll.u32 %s141_s3, 4  ;;  %p338_p0 = pnand %p345_p13, %p565_p4  ;;  %s152_s4 = int_to_ptr.vmem [resolvable:$true] %s151_s4 }
  0x15   : > { %p326_p1 = scmp.ge.s32.totalorder %s507_s14, 1  ;;  %p156_p2 = scmp.lt.s32.totalorder %s507_s14, 3 }
  0x16   : > { %s138_s6 = scalar_lea.sflag [#allocation3], %s137_s25 }
  0x17   : > { %340 = dma.hbm_to_vmem [thread:$0]  (!%p338_p0), %s150_s5, 32, %s152_s4, %s138_s6  }
  0x18   : > { %p157_p3 = pnand %p326_p1, %p156_p2 }
  0x19   : > { %s598_s7 = sand.u32 (!%p157_p3), 1, %s491_s10  }
  0x1a   : > { %160 = sbr.rel (%p157_p3) target bundleno = 47 (0x2f), region = 28  ;;  %s327_s8 = sshll.u32 (!%p157_p3), %s598_s7, 1 }
  0x1b   : > { %s163_s15 = scalar_lea.sflag (!%p157_p3), [#allocation3], %s598_s7  ;;  %s166_s16 = scalar_lea.vmem (!%p157_p3), [#allocation2], %s327_s8 }
  0x1f   : > { %478 = dma.done.wait (%p571_p8), %s163_s15, 32  }
  0x20   : > { %480 = vsyncadd (%p571_p8), %s163_s15, 4294967264  ;;  %s330_s18 = sshll.u32 %s499_s12, 1  ;;  %v199_v0 = vlaneseq  ;;  %s191_s26 = scalar_lea.vmem [#allocation5], %s327_s8  ;;  %v196_v1 = vld [vmem:[%s166_s16] sm:$0x3] }
  0x21   : > { %s217_s25 = scalar_lea.hbm %s649_s2, %s330_s18  ;;  %s219_s27 = sshll.u32 %s191_s26, 4  ;;  %v197_v2 = vld [vmem:[%s648_s1] sm:$0x3]  ;;  %s220_s27 = int_to_ptr.vmem [resolvable:$true] %s219_s27 }
  0x22   : > { %s221_s28 = sshll.u32 %s217_s25, 4  ;;  %vm201_vm0 = vcmp.lt.s32.totalorder %v199_v0, 256  ;;  %v198_v3 = vadd.f32 %v197_v2, %v196_v1  ;;  %s205_s12 = scalar_lea.sflag [#allocation4], %s598_s7  ;;  %s222_s28 = int_to_ptr.hbm [resolvable:$true] %s221_s28 }
  0x23   : > { %s439_s21 = sshra.s32 %s222_s28, 4  ;;  %s445_s6 = scalar_lea.hbm %s649_s2, 4  ;;  %s440_s21 = int_to_ptr.hbm [resolvable:$true] %s439_s21 }
  0x24   : > { %203 = vst.msk [vmem:[%s191_s26] sm:$0x3] %vm201_vm0, %v198_v3  ;;  %s441_s3 = scalar_lea.hbm %s440_s21, 2  ;;  %p446_p7 = scmp.lt.s32.totalorder %s440_s21, %s649_s2 }
  0x25   : > { %p442_p4 = scmp.ne.s32.totalorder %s440_s21, %s441_s3  ;;  %p447_p8 = scmp.lt.s32.totalorder %s445_s6, %s441_s3 }
  0x27   : > { %p443_p5 = pnand %p442_p4, %p575_p9  ;;  %p448_p10 = por %p447_p8, %p446_p7 }
  0x29   : > { %p444_p6 = pneg %p443_p5 }
  0x2b   : > { %p449_p13 = pnand %p448_p10, %p444_p6 }
  0x2d   : > { %452 = shalt.err (!%p449_p13)
}
  0x2e   : > { %335 = dma.vmem_to_hbm [thread:$0]  (%p575_p9), %s220_s27, 32, %s222_s28, %s205_s12  }
  0x2f PF: > { %s233_s7 = sand.u32 1, %s487_s9   ;;  %p342_p0 = pnand %p323_p12, %p582_p11 }
  0x30   : > { %s234_s16 = scalar_lea.sflag [#allocation4], %s233_s7 }
  0x31   : > { %p343_p1 = pneg %p342_p0 }
  0x33   : > { %482 = dma.done.wait (%p343_p1), %s234_s16, 32  }
  0x34   : > { %484 = vsyncadd (%p343_p1), %s234_s16, 4294967264  ;;  %s18_s14 = sadd.s32 1, %s507_s14   ;;  %s654_s9 = smov %s491_s10 }
  0x35   : > { %p15_p2 = scmp.ge.s32.totalorder %s18_s14, 4   ;;  %s655_s10 = smov %s495_s11 }
  0x36   : > { %s656_s11 = smov %s580_s23  ;;  %s657_s12 = smov %s503_s13 }
  0x37   : > { %s658_s13 = smov %s660_s17  ;;  %17 = sbr.rel (!%p15_p2) target bundleno = 6 (0x6), region = 76 }
  0x3c   :  { %240 = vsyncpa [#allocation3], 1 }
  0x3d   :  { %242 = vsyncpa [#allocation3 + $0x1], 1 }
  0x3e   :  { %243 = vsyncpa [#allocation4], 1 }
  0x3f   :  { %245 = vsyncpa [#allocation4 + $0x1], 1 }

</bundles_post_ra>
